<compile_context>
chip_gen: v7x
topology: tpu7x:2x2x1
jax: 0.10.0
libtpu: 0.0.40
codegen_flags: <defaults>
</compile_context>

<pallas_src>
import jax
import jax.numpy as jnp
from jax import lax
from jax.experimental import pallas as pl
from jax.experimental.pallas import tpu as pltpu


def _round_up(x, m):
    return (x + m - 1) // m * m


# --------------------------------------------------------------------------
# Pallas kernel: one (image, pixel-tile) pair per grid step.
# --------------------------------------------------------------------------
def _make_encoder_kernel(H, W, T):
    """Kernel closure over static image geometry (H, W) and pixel-tile size T."""
    f32 = jnp.float32
    inv_w = 1.0 / float(W)

    def kernel(patches_ref, w_ref, out_ref):
        # patches_ref: (1, Kp, T) bf16  im2col slab for this pixel tile
        # w_ref      : (80, Kp)   bf16  folded weights, rows 8t..8t+2 = embed tap t
        # out_ref    : (1, 3, T)  f32   stego pixels (NCHW, spatial flattened)

        # Single bf16 MXU matmul with f32 accumulation; T is lane-dense.
        prod = jnp.dot(w_ref[...], patches_ref[0], preferred_element_type=f32)

        # ---- border-validity masks, generated in-register (no HBM stream) ----
        p = pl.program_id(1) * T + lax.broadcasted_iota(jnp.int32, (1, T), 1)
        pf = p.astype(f32)
        # vertical validity: row >= 1  <=>  p >= W ;  row <= H-2  <=>  p < (H-1)*W
        rv_up = (p >= W).astype(f32)
        rv_dn = (p < (H - 1) * W).astype(f32)
        # horizontal validity: exact division-free "p mod W == 0" test in f32
        # (p, q, q*W are integers < 2^24, so pf - q*W is computed exactly).
        q0 = jnp.floor(pf * inv_w + 0.5)
        cv_lt = ((pf - q0 * W) != 0.0).astype(f32)            # col >= 1
        q1 = jnp.floor((pf + 1.0) * inv_w + 0.5)
        cv_rt = (((pf + 1.0) - q1 * W) != 0.0).astype(f32)    # col <= W-2
        one = jnp.ones((1, T), f32)
        rv = (rv_up, one, rv_dn)     # embed-tap vertical offset -1, 0, +1
        cv = (cv_lt, one, cv_rt)     # embed-tap horizontal offset -1, 0, +1

        # ---- masked per-tap accumulation (8-sublane-aligned row groups) ----
        acc = prod[8 * 4:8 * 4 + 3, :]          # centre tap: always valid
        for a in range(3):
            for b in range(3):
                if a == 1 and b == 1:
                    continue
                t = 3 * a + b
                contrib = prod[8 * t:8 * t + 3, :]
                if a == 1:
                    m = cv[b]
                elif b == 1:
                    m = rv[a]
                else:
                    m = rv[a] * cv[b]
                acc = acc + m * contrib
        out_ref[0] = acc                          # (3, T) lane-dense store

    return kernel


# --------------------------------------------------------------------------
# Wrapper-side weight folding (exact linear algebra, f32 / HIGHEST precision).
# --------------------------------------------------------------------------
def _fold_weights(params, C):
    """Fold conv3x3/conv5x5 -> 1x1 fusion -> embed 3x3 into per-embed-tap weights.

    Returns (80, Kp) bf16 weights (rows 8t+o, o<3, hold embed-tap t's weights over
    the column layout [49*C x-taps (r,s,c) | 9 message taps | ones]) and Kp.
    """
    HI = lax.Precision.HIGHEST
    w3, b3 = params["w3"], params["b3"]          # (64,C,3,3), (64,)
    w5, b5 = params["w5"], params["b5"]          # (64,C,5,5), (64,)
    wf, bf = params["wf"], params["bf"]          # (64,128,1,1), (64,)
    we, be = params["we"], params["be"]          # (3,128,3,3), (3,)

    # 1) fold the 1x1 feature_fusion into the two convs (exact).
    wfA = wf[:, :64, 0, 0]                       # acts on feat3
    wfB = wf[:, 64:, 0, 0]                       # acts on feat5
    w3e = jnp.einsum("mn,ncab->mcab", wfA, w3, precision=HI)
    w5e = jnp.einsum("mn,ncab->mcab", wfB, w5, precision=HI)
    b_eff = (jnp.einsum("mn,n->m", wfA, b3, precision=HI)
             + jnp.einsum("mn,n->m", wfB, b5, precision=HI) + bf)      # (64,)

    # 2) merge the 3x3 branch into the centre of the 5x5 kernel (exact).
    w1 = w5e.at[:, :, 1:4, 1:4].add(w3e)                               # (64,C,5,5)

    # 3) split embed weights: fused-feature part + rank-1 repeated-message part.
    weF = we[:, :64, :, :]                                             # (3,64,3,3)
    wmsg = jnp.sum(we[:, 64:, :, :], axis=1)                           # (3,3,3)

    # 4) compose embed tap (a,b) with the folded 5x5 into a 7x7 weight per tap.
    WX = jnp.zeros((3, 3, 3, C, 7, 7), jnp.float32)                    # (o,a,b,c,r,s)
    for a in range(3):
        for b in range(3):
            blk = jnp.einsum("om,mcuv->ocuv", weF[:, :, a, b], w1, precision=HI)
            WX = WX.at[:, a, b, :, a:a + 5, b:b + 5].add(blk)
    # per-tap x-weights, columns ordered (r, s, c) to match the patch rows.
    WXr = jnp.transpose(WX, (1, 2, 0, 4, 5, 3)).reshape(9, 3, 49 * C)

    # message columns: tap t only touches message-patch column t.
    wm_t = jnp.transpose(wmsg, (1, 2, 0)).reshape(9, 3)                # (tap, o)
    WM = wm_t[:, :, None] * jnp.eye(9, dtype=jnp.float32)[:, None, :]  # (tap,o,9)

    # per-tap intermediate-bias contribution hits the ones column; the embed
    # bias be is folded into the always-valid centre tap (no separate bias ref).
    wb = jnp.einsum("omab,m->oab", weF, b_eff, precision=HI)           # (3,3,3)
    WB = jnp.transpose(wb, (1, 2, 0)).reshape(9, 3, 1)
    WB = WB.at[4, :, 0].add(be)

    wtap = jnp.concatenate([WXr, WM, WB], axis=-1)                     # (9,3,49C+10)
    kr = wtap.shape[-1]
    kp = _round_up(kr, 16)                                             # bf16 K pack
    w80 = jnp.zeros((10, 8, kp), jnp.float32)                          # 8-row groups
    w80 = w80.at[:9, 0:3, :kr].set(wtap)
    return w80.reshape(80, kp).astype(jnp.bfloat16), kp


def _build_patches(x, message, kp, hw_pad):
    """(B, Kp, HWp) bf16: 7x7 im2col of x (pad 3) | 3x3 im2col of msg (pad 1) | ones."""
    B, C, H, W = x.shape
    HW = H * W
    xp = jnp.pad(x, ((0, 0), (0, 0), (3, 3), (3, 3)))
    cols = [xp[:, :, r:r + H, s:s + W] for r in range(7) for s in range(7)]
    p7 = jnp.stack(cols, axis=1).reshape(B, 49 * C, HW)
    mp = jnp.pad(message, ((0, 0), (1, 1), (1, 1)))
    mcols = [mp[:, a:a + H, b:b + W] for a in range(3) for b in range(3)]
    pm = jnp.stack(mcols, axis=1).reshape(B, 9, HW)
    ones = jnp.ones((B, 1, HW), jnp.float32)
    pat = jnp.concatenate([p7, pm, ones], axis=1).astype(jnp.bfloat16)
    return jnp.pad(pat, ((0, 0), (0, kp - pat.shape[1]), (0, hw_pad - HW)))


def multi_scale_encoder(x_nchw, message, params, *, tile_pixels=2048):
    """x_nchw: (B, C, H, W) f32; message: (B, H, W) f32 -> (B, 3, H, W) f32."""
    B, C, H, W = x_nchw.shape
    HW = H * W

    w80, kp = _fold_weights(params, C)

    # Pixel-tile size: lane-dense (multiple of 128) and VMEM-safe on all
    # generations: 2 x (kp x T) bf16 patches + (80 x T) f32 prod + out tile
    # ~= 1 MiB at C=3, T=2048  (well under the 16/32 MiB scoped limits).
    t_hw = min(tile_pixels, _round_up(HW, 128))
    hw_pad = _round_up(HW, t_hw)
    n_tiles = hw_pad // t_hw

    patches = _build_patches(x_nchw, message, kp, hw_pad)   # (B, Kp, HWp) bf16
    kernel = _make_encoder_kernel(H, W, t_hw)

    flops = 2 * B * hw_pad * 80 * kp + B * hw_pad * 9 * 3 * 2
    bytes_accessed = patches.size * 2 + w80.size * 2 + B * 3 * hw_pad * 4

    out = pl.pallas_call(
        kernel,
        out_shape=jax.ShapeDtypeStruct((B, 3, hw_pad), jnp.float32),
        grid_spec=pltpu.PrefetchScalarGridSpec(
            num_scalar_prefetch=0,
            grid=(B, n_tiles),
            in_specs=[
                pl.BlockSpec((1, kp, t_hw), lambda b, p: (b, 0, p)),   # patches
                pl.BlockSpec((80, kp), lambda b, p: (0, 0)),           # weights
            ],
            out_specs=pl.BlockSpec((1, 3, t_hw), lambda b, p: (b, 0, p)),
        ),
        compiler_params=pltpu.CompilerParams(
            dimension_semantics=("parallel", "parallel")),              # both TCs
        cost_estimate=pl.CostEstimate(flops=int(flops), transcendentals=0,
                                      bytes_accessed=int(bytes_accessed)),
        # If traces ever show exposed DMA, add pipeline_mode=pl.Buffered(3) to
        # the patches BlockSpec (left off here: double-buffering suffices).
    )(patches, w80)

    return out[:, :, :HW].reshape(B, 3, H, W)               # free reshape -> NCHW


# --------------------------------------------------------------------------
# Params / pure-JAX reference (PyTorch layout) / demo
# --------------------------------------------------------------------------
def init_params(key, input_channels=3):
    """Deterministic PyTorch-shaped (OIHW) params, kaiming-uniform-ish."""
    ks = jax.random.split(key, 8)

    def u(k, shape, fan_in):
        bound = 1.0 / jnp.sqrt(float(fan_in))
        return jax.random.uniform(k, shape, jnp.float32, -bound, bound)

    c = input_channels
    return {
        "w3": u(ks[0], (64, c, 3, 3), c * 9),   "b3": u(ks[1], (64,), c * 9),
        "w5": u(ks[2], (64, c, 5, 5), c * 25),  "b5": u(ks[3], (64,), c * 25),
        "wf": u(ks[4], (64, 128, 1, 1), 128),   "bf": u(ks[5], (64,), 128),
        # effective in-channels of embed_message = 64 fused + 64 repeated message
        "we": u(ks[6], (3, 128, 3, 3), 128 * 9), "be": u(ks[7], (3,), 128 * 9),
    }


def reference(x, message, params):
    """Pure-JAX reference of the PyTorch forward (NCHW, OIHW), f32/HIGHEST."""
    dn = ("NCHW", "OIHW", "NCHW")
    HI = lax.Precision.HIGHEST
    f3 = lax.conv_general_dilated(x, params["w3"], (1, 1), ((1, 1), (1, 1)),
                                  dimension_numbers=dn, precision=HI) \
        + params["b3"][None, :, None, None]
    f5 = lax.conv_general_dilated(x, params["w5"], (1, 1), ((2, 2), (2, 2)),
                                  dimension_numbers=dn, precision=HI) \
        + params["b5"][None, :, None, None]
    comb = jnp.concatenate([f3, f5], axis=1)
    fused = lax.conv_general_dilated(comb, params["wf"], (1, 1), ((0, 0), (0, 0)),
                                     dimension_numbers=dn, precision=HI) \
        + params["bf"][None, :, None, None]
    msg_exp = jnp.broadcast_to(message[:, None, :, :], fused.shape)
    ci = jnp.concatenate([fused, msg_exp], axis=1)
    out = lax.conv_general_dilated(ci, params["we"], (1, 1), ((1, 1), (1, 1)),
                                   dimension_numbers=dn, precision=HI) \
        + params["be"][None, :, None, None]
    return out


if __name__ == "__main__":
    key = jax.random.PRNGKey(0)
    kparams, kx, km = jax.random.split(key, 3)

    B, C, H, W = 2, 3, 16, 16
    params = init_params(kparams, input_channels=C)
    x = jax.random.normal(kx, (B, C, H, W), jnp.float32)
    message = (jax.random.uniform(km, (B, H, W), jnp.float32) > 0.5).astype(jnp.float32)

    run = jax.jit(multi_scale_encoder)
    stego = jax.block_until_ready(run(x, message, params))
    assert stego.shape == (B, 3, H, W), stego.shape

    ref = reference(x, message, params)
    # bf16 patches/weights (HBM-bandwidth optimisation per the perf review) vs.
    # an f32/HIGHEST reference: tolerance deliberately loosened to 2e-2.
    if not jnp.allclose(stego, ref, rtol=2e-2, atol=2e-2):
        raise AssertionError(
            f"mismatch vs reference: max abs err = {jnp.max(jnp.abs(stego - ref))}")

    print("KERNEL_OK")
</pallas_src>

<mosaic_0001>
module attributes {stable_mosaic.version = 11 : i64} {
  func.func @kernel(%arg0: i32, %arg1: i32, %arg2: memref<1x160x256xbf16, #tpu.memory_space<vmem>>, %arg3: memref<80x160xbf16, #tpu.memory_space<vmem>>, %arg4: memref<1x3x256xf32, #tpu.memory_space<vmem>>) attributes {dimension_semantics = [#tpu.dimension_semantics<parallel>, #tpu.dimension_semantics<parallel>], iteration_bounds = array<i64: 2, 1>, scalar_prefetch = 0 : i64, scratch_operands = 0 : i64, tpu.core_type = #tpu.core_type<tc>, window_params = [{transform_indices = @transform_0, window_bounds = array<i64: 1, 160, 256>}, {pipeline_mode = #tpu.pipeline_mode<synchronous>, transform_indices = @transform_1, window_bounds = array<i64: 80, 160>}, {transform_indices = @transform_2, window_bounds = array<i64: 1, 3, 256>}]} {
    %c0 = arith.constant 0 : index
    %c0_0 = arith.constant 0 : index
    %0 = vector.load %arg3[%c0, %c0_0] : memref<80x160xbf16, #tpu.memory_space<vmem>>, vector<80x160xbf16>
    %c0_1 = arith.constant 0 : index
    %c0_2 = arith.constant 0 : index
    %c0_3 = arith.constant 0 : index
    %1 = vector.load %arg2[%c0_1, %c0_2, %c0_3] : memref<1x160x256xbf16, #tpu.memory_space<vmem>>, vector<1x160x256xbf16>
    %2 = vector.shape_cast %1 : vector<1x160x256xbf16> to vector<160x256xbf16>
    %cst = arith.constant dense<0.000000e+00> : vector<80x256xf32>
    %3 = tpu.matmul %0, %2, %cst {dimension_numbers = #tpu.dot_dimension_numbers<[1], [0], [0], [1], [0, 0, 1, 1], [], []>} : vector<80x160xbf16>, vector<160x256xbf16>, vector<80x256xf32> -> vector<80x256xf32>
    %c256_i32 = arith.constant 256 : i32
    %4 = arith.muli %arg1, %c256_i32 : i32
    %5 = tpu.iota {dimensions = array<i32: 1>} : vector<1x256xi32>
    %6 = vector.broadcast %4 : i32 to vector<1x256xi32>
    %7 = arith.addi %6, %5 : vector<1x256xi32>
    %8 = arith.sitofp %7 : vector<1x256xi32> to vector<1x256xf32>
    %c16_i32 = arith.constant 16 : i32
    %9 = vector.broadcast %c16_i32 : i32 to vector<1x256xi32>
    %10 = arith.cmpi sge, %7, %9 : vector<1x256xi32>
    %11 = arith.extui %10 : vector<1x256xi1> to vector<1x256xi32>
    %12 = arith.sitofp %11 : vector<1x256xi32> to vector<1x256xf32>
    %c240_i32 = arith.constant 240 : i32
    %13 = vector.broadcast %c240_i32 : i32 to vector<1x256xi32>
    %14 = arith.cmpi slt, %7, %13 : vector<1x256xi32>
    %15 = arith.extui %14 : vector<1x256xi1> to vector<1x256xi32>
    %16 = arith.sitofp %15 : vector<1x256xi32> to vector<1x256xf32>
    %cst_4 = arith.constant 6.250000e-02 : f32
    %17 = vector.broadcast %cst_4 : f32 to vector<1x256xf32>
    %18 = arith.mulf %8, %17 : vector<1x256xf32>
    %cst_5 = arith.constant 5.000000e-01 : f32
    %19 = vector.broadcast %cst_5 : f32 to vector<1x256xf32>
    %20 = arith.addf %18, %19 : vector<1x256xf32>
    %21 = math.floor %20 : vector<1x256xf32>
    %cst_6 = arith.constant 1.600000e+01 : f32
    %22 = vector.broadcast %cst_6 : f32 to vector<1x256xf32>
    %23 = arith.mulf %21, %22 : vector<1x256xf32>
    %24 = arith.subf %8, %23 : vector<1x256xf32>
    %cst_7 = arith.constant 0.000000e+00 : f32
    %25 = vector.broadcast %cst_7 : f32 to vector<1x256xf32>
    %26 = arith.cmpf one, %24, %25 : vector<1x256xf32>
    %27 = arith.extui %26 : vector<1x256xi1> to vector<1x256xi32>
    %28 = arith.sitofp %27 : vector<1x256xi32> to vector<1x256xf32>
    %cst_8 = arith.constant 1.000000e+00 : f32
    %29 = vector.broadcast %cst_8 : f32 to vector<1x256xf32>
    %30 = arith.addf %8, %29 : vector<1x256xf32>
    %cst_9 = arith.constant 6.250000e-02 : f32
    %31 = vector.broadcast %cst_9 : f32 to vector<1x256xf32>
    %32 = arith.mulf %30, %31 : vector<1x256xf32>
    %cst_10 = arith.constant 5.000000e-01 : f32
    %33 = vector.broadcast %cst_10 : f32 to vector<1x256xf32>
    %34 = arith.addf %32, %33 : vector<1x256xf32>
    %35 = math.floor %34 : vector<1x256xf32>
    %cst_11 = arith.constant 1.000000e+00 : f32
    %36 = vector.broadcast %cst_11 : f32 to vector<1x256xf32>
    %37 = arith.addf %8, %36 : vector<1x256xf32>
    %cst_12 = arith.constant 1.600000e+01 : f32
    %38 = vector.broadcast %cst_12 : f32 to vector<1x256xf32>
    %39 = arith.mulf %35, %38 : vector<1x256xf32>
    %40 = arith.subf %37, %39 : vector<1x256xf32>
    %cst_13 = arith.constant 0.000000e+00 : f32
    %41 = vector.broadcast %cst_13 : f32 to vector<1x256xf32>
    %42 = arith.cmpf one, %40, %41 : vector<1x256xf32>
    %43 = arith.extui %42 : vector<1x256xi1> to vector<1x256xi32>
    %44 = arith.sitofp %43 : vector<1x256xi32> to vector<1x256xf32>
    %45 = vector.extract_strided_slice %3 {offsets = [32, 0], sizes = [3, 256], strides = [1, 1]} : vector<80x256xf32> to vector<3x256xf32>
    %46 = vector.extract_strided_slice %3 {offsets = [0, 0], sizes = [3, 256], strides = [1, 1]} : vector<80x256xf32> to vector<3x256xf32>
    %47 = arith.mulf %12, %28 : vector<1x256xf32>
    %48 = vector.broadcast %47 : vector<1x256xf32> to vector<3x256xf32>
    %49 = arith.mulf %48, %46 : vector<3x256xf32>
    %50 = arith.addf %45, %49 : vector<3x256xf32>
    %51 = vector.extract_strided_slice %3 {offsets = [8, 0], sizes = [3, 256], strides = [1, 1]} : vector<80x256xf32> to vector<3x256xf32>
    %52 = vector.broadcast %12 : vector<1x256xf32> to vector<3x256xf32>
    %53 = arith.mulf %52, %51 : vector<3x256xf32>
    %54 = arith.addf %50, %53 : vector<3x256xf32>
    %55 = vector.extract_strided_slice %3 {offsets = [16, 0], sizes = [3, 256], strides = [1, 1]} : vector<80x256xf32> to vector<3x256xf32>
    %56 = arith.mulf %12, %44 : vector<1x256xf32>
    %57 = vector.broadcast %56 : vector<1x256xf32> to vector<3x256xf32>
    %58 = arith.mulf %57, %55 : vector<3x256xf32>
    %59 = arith.addf %54, %58 : vector<3x256xf32>
    %60 = vector.extract_strided_slice %3 {offsets = [24, 0], sizes = [3, 256], strides = [1, 1]} : vector<80x256xf32> to vector<3x256xf32>
    %61 = vector.broadcast %28 : vector<1x256xf32> to vector<3x256xf32>
    %62 = arith.mulf %61, %60 : vector<3x256xf32>
    %63 = arith.addf %59, %62 : vector<3x256xf32>
    %64 = vector.extract_strided_slice %3 {offsets = [40, 0], sizes = [3, 256], strides = [1, 1]} : vector<80x256xf32> to vector<3x256xf32>
    %65 = vector.broadcast %44 : vector<1x256xf32> to vector<3x256xf32>
    %66 = arith.mulf %65, %64 : vector<3x256xf32>
    %67 = arith.addf %63, %66 : vector<3x256xf32>
    %68 = vector.extract_strided_slice %3 {offsets = [48, 0], sizes = [3, 256], strides = [1, 1]} : vector<80x256xf32> to vector<3x256xf32>
    %69 = arith.mulf %16, %28 : vector<1x256xf32>
    %70 = vector.broadcast %69 : vector<1x256xf32> to vector<3x256xf32>
    %71 = arith.mulf %70, %68 : vector<3x256xf32>
    %72 = arith.addf %67, %71 : vector<3x256xf32>
    %73 = vector.extract_strided_slice %3 {offsets = [56, 0], sizes = [3, 256], strides = [1, 1]} : vector<80x256xf32> to vector<3x256xf32>
    %74 = vector.broadcast %16 : vector<1x256xf32> to vector<3x256xf32>
    %75 = arith.mulf %74, %73 : vector<3x256xf32>
    %76 = arith.addf %72, %75 : vector<3x256xf32>
    %77 = vector.extract_strided_slice %3 {offsets = [64, 0], sizes = [3, 256], strides = [1, 1]} : vector<80x256xf32> to vector<3x256xf32>
    %78 = arith.mulf %16, %44 : vector<1x256xf32>
    %79 = vector.broadcast %78 : vector<1x256xf32> to vector<3x256xf32>
    %80 = arith.mulf %79, %77 : vector<3x256xf32>
    %81 = arith.addf %76, %80 : vector<3x256xf32>
    %c0_14 = arith.constant 0 : index
    %c0_15 = arith.constant 0 : index
    %c0_16 = arith.constant 0 : index
    %82 = vector.load %arg4[%c0_14, %c0_15, %c0_16] : memref<1x3x256xf32, #tpu.memory_space<vmem>>, vector<1x3x256xf32>
    %83 = vector.shape_cast %82 : vector<1x3x256xf32> to vector<3x256xf32>
    %84 = vector.shape_cast %81 : vector<3x256xf32> to vector<1x3x256xf32>
    tpu.vector_store %arg4[%c0_14, %c0_15, %c0_16], %84 {strides = array<i32>} : memref<1x3x256xf32, #tpu.memory_space<vmem>>, vector<1x3x256xf32>,
    return
  }
  func.func @transform_0(%arg0: i32, %arg1: i32) -> (i32, i32, i32) {
    %c0_i32 = arith.constant 0 : i32
    %c0_i32_0 = arith.constant 0 : i32
    return %arg0, %c0_i32, %arg1 : i32, i32, i32
  }
  func.func @transform_1(%arg0: i32, %arg1: i32) -> (i32, i32) {
    %c0_i32 = arith.constant 0 : i32
    %c0_i32_0 = arith.constant 0 : i32
    %c0_i32_1 = arith.constant 0 : i32
    return %c0_i32, %c0_i32_0 : i32, i32
  }
  func.func @transform_2(%arg0: i32, %arg1: i32) -> (i32, i32, i32) {
    %c0_i32 = arith.constant 0 : i32
    %c0_i32_0 = arith.constant 0 : i32
    return %arg0, %c0_i32, %arg1 : i32, i32, i32
  }
}

</mosaic_0001>

<bundles_post_ra>
// kernel: mul.8
= control target key start
LH: loop header
LB: loop body
LE: loop exit
PB: predicated region body
PF: predicated region fallthrough
CT: control target
= control target key end

     0   :  { %vm16_vm0 = vcmask 23552   ;;  %s42_s12 = smov 3   ;;  %vm22_vm1 = vcmask 72752   ;;  %vm28_vm2 = vcmask 48152   ;;  %s65_s0 = inlined_call_operand.vmem [shape: f32[3,3,3], index: 0, kind: input, shape index: {}]   ;;  %s66_s1 = inlined_call_operand.vmem [shape: f32[9,3], index: 1, kind: output, shape index: {}]  }
   0x1   :  { %v37_v0 = vld [vmem:[%s65_s0 + $0x8] sm:$0xf]  ;;  %v38_v1 = vld [vmem:[%s65_s0 + $0x4] sm:$0xf]  ;;  %v13_v2 = vld [vmem:[%s65_s0] sm:$0xf] }
   0x2   :  { %8 = vst [vmem:[#allocation1 + $0x10] sm:$0xf] %v37_v0  ;;  %12 = vst [vmem:[#allocation1 + $0x8] sm:$0xf] %v38_v1  ;;  %s41_s0 = smov 6  }
   0x3   :  { %14 = vst [vmem:[#allocation1] sm:$0xf] %v13_v2 }
   0xa   :  { %v19_v3 = vld [vmem:[#allocation1 + $0x2] ss:$8 sm:$0x7]   ;;  %v15_v4 = vld [vmem:[#allocation1] ss:$8 sm:$0x7]  }
   0xb   :  { %20 = vrot.lane.b32.xlu0 %v19_v3, %s41_s0  ;;  %v25_v5 = vld [vmem:[#allocation1 + $0x1] ss:$8 sm:$0x7]   ;;  %17 = vst.msk [vmem:[#allocation0] sm:$0x7] %vm16_vm0, %v15_v4  }
   0xf   :  { %26 = vrot.lane.b32.xlu0 %v25_v5, %s42_s12 }
  0x7d   :  { %v21_v6 = vpop.permute.xlu0 %20  }
  0x7e   :  { %23 = vst.msk [vmem:[#allocation0] sm:$0x7] %vm22_vm1, %v21_v6  }
  0x81   :  { %v27_v7 = vpop.permute.xlu0 %26  }
  0x82   :  { %29 = vst.msk [vmem:[#allocation0] sm:$0x7] %vm28_vm2, %v27_v7  }
  0x89   :  { %v33_v8 = vld [vmem:[#allocation0] sm:$0xf] }
  0x8a   :  { %35 = vst [vmem:[%s66_s1] sm:$0xf] %v33_v8 }

// kernel: multi_scale_encoder.1
= control target key start
LH: loop header
LB: loop body
LE: loop exit
PB: predicated region body
PF: predicated region fallthrough
CT: control target
= control target key end

     0   :  { %s826_s9 = smov 0   ;;  %s828_s10 = smov 0   ;;  %s924_s0 = inlined_call_operand.vmem [shape: bf16[2,160,256], index: 0, kind: input, shape index: {}]   ;;  %s925_s1 = inlined_call_operand.vmem [shape: bf16[80,160], index: 1, kind: input, shape index: {}]   ;;  %s926_s2 = inlined_call_operand.vmem [shape: f32[2,3,256], index: 2, kind: output, shape index: {}]  }
   0x1   :  { %s830_s11 = smov 0  }
   0x2 LB: > { %s24_s12 = sadd.s32 1, %s804_s10  ;;  %p647_p0 = scmp.ge.s32.totalorder %s808_s11, 1  ;;  %s808_s11 = sphi %s830_s11, %s12_s11   ;;  %s804_s10 = sphi %s828_s10, %s928_s10   ;;  %s800_s9 = sphi %s826_s9, %s927_s9  }
   0x3   : > { %p26_p1 = scmp.ge.s32.totalorder %s24_s12, 2  ;;  %p133_p2 = scmp.lt.s32.totalorder %s808_s11, 3 }
   0x5   : > { %s930_s12 = smov (%p26_p1, %s24_s12), 0  ;;  %p134_p3 = pnand %p647_p0, %p133_p2 }
   0x6   : > { %p164_p4 = scmp.lt.s32.totalorder (!%p134_p3), %s800_s9, 1  ;;  %vm359_vm0 = vcmask (!%p134_p3), 261120   ;;  %v773_v0 = vld [vmem:[%s925_s1 + $0x4] ss:$8 sps:$4 sm:$0xff] (!%p134_p3)   ;;  %v782_v1 = vld [vmem:[%s925_s1 + $0x34] ss:$8 sps:$4 sm:$0xff] (!%p134_p3)   ;;  %v457_v30 = vlaneseq (!%p134_p3) }
   0x7   : > { %137 = sbr.rel (%p134_p3) target bundleno = 307 (0x133), region = 28  ;;  %681 = vmatprep.mubr.msk.bf16.mxu0 (!%p134_p3), %vm359_vm0, %v773_v0  ;;  %684 = vmatprep.mubr.msk.bf16.mxu1 (!%p134_p3), %vm359_vm0, %v782_v1  ;;  %v771_v22 = vld [vmem:[%s925_s1] ss:$8 sps:$4 sm:$0xff] (!%p134_p3)   ;;  %v780_v23 = vld [vmem:[%s925_s1 + $0x30] ss:$8 sps:$4 sm:$0xff] (!%p134_p3)   ;;  %v810_v0 = vmov (!%p134_p3), 0.0  }
   0x8   : > { %v774_v24 = vld [vmem:[%s925_s1 + $0x14] ss:$8 sps:$4 sm:$0xff] (!%p134_p3)   ;;  %v783_v25 = vld [vmem:[%s925_s1 + $0x44] ss:$8 sps:$4 sm:$0xff] (!%p134_p3)   ;;  %v776_v26 = vld [vmem:[%s925_s1 + $0x10] ss:$8 sps:$4 sm:$0xff] (!%p134_p3)  }
   0x9   : > { %v785_v27 = vld [vmem:[%s925_s1 + $0x40] ss:$8 sps:$4 sm:$0xff] (!%p134_p3)   ;;  %v777_v28 = vld [vmem:[%s925_s1 + $0x24] ss:$8 sps:$4 sm:$0xff] (!%p134_p3)   ;;  %v458_v31 = vand.u32 (!%p134_p3), 127, %v457_v30 }
   0xa   : > { %v779_v29 = vld [vmem:[%s925_s1 + $0x20] ss:$8 sps:$4 sm:$0xff] (!%p134_p3)  }
   0xb   : > { %v463_v32 = vcvt.s32.f32 (!%p134_p3), %v458_v31  ;;  %v907_v33 = vadd.s32 (!%p134_p3), 128, %v458_v31  ;;  %vm465_vm1 = vcmp.ge.s32.totalorder (!%p134_p3), %v458_v31, 16 }
   0xc   : > { %v686_v1 = vsel (!%p134_p3), %vm465_vm1, 1.0, %v810_v0 }
   0xd   : > { %v477_v34 = vmul.f32 (!%p134_p3), 0.0625, %v463_v32  ;;  %v493_v35 = vadd.f32 (!%p134_p3), 1.0, %v463_v32  ;;  %v464_v36 = vcvt.s32.f32 (!%p134_p3), %v907_v33  ;;  %vm472_vm6 = vcmp.lt.s32.totalorder (!%p134_p3), %v907_v33, 240 }
   0xe   : > { %s932_s9 = smov (!%p164_p4, %s800_s9), 1 }
   0xf   : > { %s715_s15 = smul.u32 160, %s932_s9  ;;  %v479_v37 = vadd.f32 0.5, %v477_v34  ;;  %v495_v38 = vmul.f32 0.0625, %v493_v35  ;;  %v478_v39 = vmul.f32 0.0625, %v464_v36  ;;  %v494_v40 = vadd.f32 1.0, %v464_v36  ;;  %s694_s13 = sshll.u32 %s932_s9, 3 }
  0x10   : > { %s181_s16 = scalar_lea.vmem %s926_s2, %s694_s13 }
  0x11   : > { %s857_s20 = scalar_lea.vmem %s924_s0, %s715_s15  ;;  %v481_v41 = vfloor.f32 %v479_v37  ;;  %v497_v42 = vadd.f32 0.5, %v495_v38  ;;  %v480_v43 = vadd.f32 0.5, %v478_v39  ;;  %v496_v44 = vmul.f32 0.0625, %v494_v40 }
  0x12   : > { %v741_v2 = vld [vmem:[%s857_s20 + $0x4] ss:$8 sps:$4 sm:$0xff]   ;;  %v743_v3 = vld [vmem:[%s857_s20] ss:$8 sps:$4 sm:$0xff]   ;;  %v744_v4 = vld [vmem:[%s857_s20 + $0x14] ss:$8 sps:$4 sm:$0xff]  }
  0x13   : > { %375 = vmatprep.subr.bf16.mxu0 %v741_v2  ;;  %695 = vmatprep.subr.bf16.mxu1 %v741_v2  ;;  %v746_v5 = vld [vmem:[%s857_s20 + $0x10] ss:$8 sps:$4 sm:$0xff]   ;;  %v747_v6 = vld [vmem:[%s857_s20 + $0x24] ss:$8 sps:$4 sm:$0xff]   ;;  %v749_v7 = vld [vmem:[%s857_s20 + $0x20] ss:$8 sps:$4 sm:$0xff]   ;;  %v499_v46 = vfloor.f32 %v497_v42  ;;  %v482_v47 = vfloor.f32 %v480_v43 }
  0x14   : > { %376 = vmatpush1.bf16.msra.mxu0 %v743_v3  ;;  %705 = vmatpush1.bf16.msra.mxu1 %v743_v3  ;;  %v750_v8 = vld [vmem:[%s857_s20 + $0x34] ss:$8 sps:$4 sm:$0xff]   ;;  %v752_v9 = vld [vmem:[%s857_s20 + $0x30] ss:$8 sps:$4 sm:$0xff]   ;;  %v753_v10 = vld [vmem:[%s857_s20 + $0x44] ss:$8 sps:$4 sm:$0xff]  }
  0x15   : > { %377 = vmatprep.subr.bf16.mxu0 %v744_v4  ;;  %696 = vmatprep.subr.bf16.mxu1 %v744_v4  ;;  %v755_v11 = vld [vmem:[%s857_s20 + $0x40] ss:$8 sps:$4 sm:$0xff]   ;;  %v756_v12 = vld [vmem:[%s857_s20 + $0x54] ss:$8 sps:$4 sm:$0xff]   ;;  %v758_v13 = vld [vmem:[%s857_s20 + $0x50] ss:$8 sps:$4 sm:$0xff]  }
  0x16   : > { %v759_v14 = vld [vmem:[%s857_s20 + $0x64] ss:$8 sps:$4 sm:$0xff]   ;;  %v761_v15 = vld [vmem:[%s857_s20 + $0x60] ss:$8 sps:$4 sm:$0xff]   ;;  %v762_v16 = vld [vmem:[%s857_s20 + $0x74] ss:$8 sps:$4 sm:$0xff]  }
  0x17   : > { %v764_v17 = vld [vmem:[%s857_s20 + $0x70] ss:$8 sps:$4 sm:$0xff]   ;;  %v765_v18 = vld [vmem:[%s857_s20 + $0x84] ss:$8 sps:$4 sm:$0xff]   ;;  %v767_v19 = vld [vmem:[%s857_s20 + $0x80] ss:$8 sps:$4 sm:$0xff]  }
  0x18   : > { %378 = vmatpush1.bf16.msra.mxu0 %v746_v5  ;;  %706 = vmatpush1.bf16.msra.mxu1 %v746_v5  ;;  %v768_v20 = vld [vmem:[%s857_s20 + $0x94] ss:$8 sps:$4 sm:$0xff]   ;;  %v770_v21 = vld [vmem:[%s857_s20 + $0x90] ss:$8 sps:$4 sm:$0xff]   ;;  %v483_v45 = vmul.f32 16.0, %v481_v41  ;;  %v498_v48 = vadd.f32 0.5, %v496_v44 }
  0x19   : > { %379 = vmatprep.subr.bf16.mxu0 %v747_v6  ;;  %697 = vmatprep.subr.bf16.mxu1 %v747_v6  ;;  %v501_v53 = vmul.f32 16.0, %v499_v46  ;;  %v484_v55 = vmul.f32 16.0, %v482_v47 }
  0x1a   : > { %v485_v51 = vsub.f32 %v463_v32, %v483_v45  ;;  %v500_v57 = vfloor.f32 %v498_v48 }
  0x1b   : > { %v503_v61 = vsub.f32 %v493_v35, %v501_v53  ;;  %v486_v62 = vsub.f32 %v464_v36, %v484_v55 }
  0x1c   : > { %380 = vmatpush1.bf16.msra.mxu0 %v749_v7  ;;  %707 = vmatpush1.bf16.msra.mxu1 %v749_v7  ;;  %vm487_vm2 = vcmp.ne.f32.partialorder %v485_v51, 0.0  ;;  %v502_v63 = vmul.f32 16.0, %v500_v57 }
  0x1d   : > { %381 = vmatprep.subr.bf16.mxu0 %v750_v8  ;;  %698 = vmatprep.subr.bf16.mxu1 %v750_v8  ;;  %v688_v2 = vsel %vm487_vm2, 1.0, %v810_v0  ;;  %vm505_vm3 = vcmp.ne.f32.partialorder %v503_v61, 0.0  ;;  %vm488_vm4 = vcmp.ne.f32.partialorder %v486_v62, 0.0 }
  0x1e   : > { %v504_v7 = vsub.f32 %v494_v40, %v502_v63 }
  0x20   : > { %382 = vmatpush1.bf16.msra.mxu0 %v752_v9  ;;  %708 = vmatpush1.bf16.msra.mxu1 %v752_v9  ;;  %vm506_vm5 = vcmp.ne.f32.partialorder %v504_v7, 0.0 }
  0x21   : > { %383 = vmatprep.subr.bf16.mxu0 %v753_v10  ;;  %699 = vmatprep.subr.bf16.mxu1 %v753_v10  ;;  %v511_v10 = vmul.f32 %v688_v2, %v686_v1 }
  0x24   : > { %384 = vmatpush1.bf16.msra.mxu0 %v755_v11  ;;  %709 = vmatpush1.bf16.msra.mxu1 %v755_v11 }
  0x25   : > { %385 = vmatprep.subr.bf16.mxu0 %v756_v12  ;;  %700 = vmatprep.subr.bf16.mxu1 %v756_v12 }
  0x28   : > { %386 = vmatpush1.bf16.msra.mxu0 %v758_v13  ;;  %710 = vmatpush1.bf16.msra.mxu1 %v758_v13  ;;  %v690_v13 = vsel %vm505_vm3, 1.0, %v810_v0 }
  0x29   : > { %387 = vmatprep.subr.bf16.mxu0 %v759_v14  ;;  %701 = vmatprep.subr.bf16.mxu1 %v759_v14  ;;  %v689_v14 = vsel %vm488_vm4, 1.0, %v810_v0 }
  0x2c   : > { %388 = vmatpush1.bf16.msra.mxu0 %v761_v15  ;;  %711 = vmatpush1.bf16.msra.mxu1 %v761_v15 }
  0x2d   : > { %389 = vmatprep.subr.bf16.mxu0 %v762_v16  ;;  %702 = vmatprep.subr.bf16.mxu1 %v762_v16  ;;  %v521_v16 = vmul.f32 %v690_v13, %v686_v1 }
  0x30   : > { %390 = vmatpush1.bf16.msra.mxu0 %v764_v17  ;;  %712 = vmatpush1.bf16.msra.mxu1 %v764_v17 }
  0x31   : > { %391 = vmatprep.subr.bf16.mxu0 %v765_v18  ;;  %703 = vmatprep.subr.bf16.mxu1 %v765_v18 }
  0x34   : > { %392 = vmatpush1.bf16.msra.mxu0 %v767_v19  ;;  %713 = vmatpush1.bf16.msra.mxu1 %v767_v19 }
  0x35   : > { %393 = vmatprep.subr.bf16.mxu0 %v768_v20  ;;  %704 = vmatprep.subr.bf16.mxu1 %v768_v20  ;;  %v691_v20 = vsel %vm506_vm5, 1.0, %v810_v0 }
  0x38   : > { %394 = vmatpush1.bf16.msra.mxu0 %v770_v21  ;;  %714 = vmatpush1.bf16.msra.mxu1 %v770_v21 }
  0x3b   : > { %408 = vmatmul.mubr.bf16.vlgmr.msra.gmra.mrb[0].mxu0 %v771_v22  ;;  %438 = vmatmul.mubr.bf16.vlgmr.msra.gmra.mrb[0].mxu1 %v780_v23 }
  0x3c   : > { %682 = vmatprep.mubr.msk.bf16.mxu0 %vm359_vm0, %v774_v24  ;;  %685 = vmatprep.mubr.msk.bf16.mxu1 %vm359_vm0, %v783_v25 }
  0x43   : > { %418 = vmatmul.mubr.bf16.gmra.mrb[4].mxu0 %v776_v26  ;;  %448 = vmatmul.mubr.bf16.gmra.mrb[4].mxu1 %v785_v27  ;;  %v687_v27 = vsel %vm472_vm6, 1.0, %v810_v0 }
  0x44   : > { %683 = vmatprep.mubr.msk.bf16.mxu0 %vm359_vm0, %v777_v28  ;;  %v536_v36 = vmul.f32 %v689_v14, %v687_v27  ;;  %v546_v40 = vmul.f32 %v691_v20, %v687_v27 }
  0x4b   : > { %428 = vmatmul.mubr.bf16.gmra.mrb[8].mxu0 %v779_v29 }
 0x10e   : > { %v409_v49 = vpop.f32.mrb[0].mxu0  ;;  %v439_v50 = vpop.f32.mrb[0].mxu1 }
 0x10f   : > { %v411_v52 = vpop.f32.mrb[1].mxu0  ;;  %v441_v54 = vpop.f32.mrb[1].mxu1  ;;  %v513_v15 = vmul.f32 %v511_v10, %v409_v49  ;;  %v537_v41 = vmul.f32 %v688_v2, %v439_v50 }
 0x110   : > { %v413_v56 = vpop.f32.mrb[2].mxu0  ;;  %v443_v58 = vpop.f32.mrb[2].mxu1  ;;  %v514_v17 = vmul.f32 %v689_v14, %v411_v52  ;;  %v538_v43 = vmul.f32 %v536_v36, %v441_v54 }
 0x111   : > { %v415_v59 = vpop.f32.mrb[3].mxu0  ;;  %v445_v60 = vpop.f32.mrb[3].mxu1  ;;  %v517_v19 = vmul.f32 %v686_v1, %v413_v56 }
 0x112   : > { %v542_v48 = vmul.f32 %v687_v27, %v445_v60 }
 0x116   : > { %v419_v3 = vpop.f32.mrb[4].mxu0  ;;  %v449_v4 = vpop.f32.mrb[4].mxu1 }
 0x117   : > { %v421_v5 = vpop.f32.mrb[5].mxu0  ;;  %v451_v6 = vpop.f32.mrb[5].mxu1  ;;  %v523_v25 = vmul.f32 %v521_v16, %v419_v3  ;;  %v547_v46 = vmul.f32 %v690_v13, %v449_v4 }
 0x118   : > { %v423_v8 = vpop.f32.mrb[6].mxu0  ;;  %v453_v9 = vpop.f32.mrb[6].mxu1  ;;  %v524_v29 = vmul.f32 %v691_v20, %v421_v5  ;;  %v548_v49 = vmul.f32 %v546_v40, %v451_v6 }
 0x119   : > { %v425_v11 = vpop.f32.mrb[7].mxu0  ;;  %v454_v12 = vpop.f32.mrb[7].mxu1  ;;  %v527_v31 = vmul.f32 %v688_v2, %v423_v8 }
 0x11a   : > { %v528_v34 = vmul.f32 %v689_v14, %v425_v11 }
 0x11e   : > { %v429_v18 = vpop.f32.mrb[8].mxu0 }
 0x11f   : > { %v515_v21 = vadd.f32 %v513_v15, %v429_v18  ;;  %v431_v22 = vpop.f32.mrb[9].mxu0 }
 0x120   : > { %v516_v23 = vadd.f32 %v514_v17, %v431_v22  ;;  %v433_v24 = vpop.f32.mrb[10].mxu0 }
 0x121   : > { %v519_v26 = vadd.f32 %v517_v19, %v515_v21  ;;  %v435_v28 = vpop.f32.mrb[11].mxu0  ;;  %v531_v33 = vmul.f32 %v690_v13, %v433_v24 }
 0x122   : > { %v520_v30 = vadd.f32 %v516_v23, %v415_v59  ;;  %v532_v39 = vmul.f32 %v691_v20, %v435_v28 }
 0x123   : > { %v525_v32 = vadd.f32 %v523_v25, %v519_v26 }
 0x124   : > { %v526_v35 = vadd.f32 %v524_v29, %v520_v30 }
 0x125   : > { %v529_v37 = vadd.f32 %v527_v31, %v525_v32 }
 0x126   : > { %v530_v38 = vadd.f32 %v528_v34, %v526_v35 }
 0x127   : > { %v533_v42 = vadd.f32 %v531_v33, %v529_v37 }
 0x128   : > { %v534_v44 = vadd.f32 %v532_v39, %v530_v38 }
 0x129   : > { %v539_v45 = vadd.f32 %v537_v41, %v533_v42 }
 0x12a   : > { %v540_v47 = vadd.f32 %v538_v43, %v534_v44 }
 0x12b   : > { %v543_v51 = vadd.f32 %v539_v45, %v443_v58 }
 0x12c   : > { %v544_v52 = vadd.f32 %v542_v48, %v540_v47 }
 0x12d   : > { %v549_v53 = vadd.f32 %v547_v46, %v543_v51 }
 0x12e   : > { %v550_v55 = vadd.f32 %v548_v49, %v544_v52 }
 0x130   : > { %v553_v56 = vcombine.low %v549_v53, %v550_v55 }
 0x132   : > { %555 = vst [vmem:[%s181_s16] sm:$0x77] %v553_v56 }
 0x133 PF: > { %s12_s11 = sadd.s32 1, %s808_s11   ;;  %s927_s9 = smov %s804_s10 }
 0x134   : > { %p9_p5 = scmp.ge.s32.totalorder %s12_s11, 4   ;;  %s928_s10 = smov %s930_s12 }
 0x136   :  { %11 = sbr.rel (!%p9_p5) target bundleno = 2 (0x2), region = 58 }

</bundles_post_ra>
